<compile_context>
chip_gen: v7x
topology: tpu7x:2x2x1
jax: 0.10.0
libtpu: 0.0.40
codegen_flags: <defaults>
</compile_context>

<pallas_src>
import functools

import jax
import jax.numpy as jnp
from jax.experimental import pallas as pl
from jax.experimental.pallas import tpu as pltpu


def softmax_kernel(s_ref, o_ref):
    s = s_ref[...].astype(jnp.float32)
    m = jnp.max(s, axis=-1, keepdims=True)          # max-shift for stability
    e = jnp.exp(s - m)
    denom = jnp.sum(e, axis=-1, keepdims=True)
    o_ref[...] = (e / denom).astype(o_ref.dtype)


def _round_up(n, m):
    return ((n + m - 1) // m) * m


@functools.partial(jax.jit, static_argnames=("tile_b",))
def softmax_forward(s, *, tile_b=512):
    """Row-wise (dim=1) numerically-stable softmax of a 2D array (B, D)."""
    B, D = s.shape

    # Lane-dense feature axis: pad up to a multiple of 128 with -inf
    # (exp(-inf - m) == 0, so the padding never perturbs the row sums).
    D_pad = _round_up(D, 128)
    if D_pad != D:
        s = jnp.pad(s, ((0, 0), (0, D_pad - D)), constant_values=-jnp.inf)

    # Batch tile: multiple of 8 sublanes, no larger than the (rounded) batch.
    tile_b = max(8, min(tile_b, _round_up(B, 8)))
    grid = (pl.cdiv(B, tile_b),)

    out = pl.pallas_call(
        softmax_kernel,
        out_shape=jax.ShapeDtypeStruct((B, D_pad), s.dtype),
        grid_spec=pltpu.PrefetchScalarGridSpec(
            num_scalar_prefetch=0,
            grid=grid,
            in_specs=[pl.BlockSpec((tile_b, D_pad), lambda i: (i, 0))],
            out_specs=pl.BlockSpec((tile_b, D_pad), lambda i: (i, 0)),
        ),
        compiler_params=pltpu.CompilerParams(
            dimension_semantics=("parallel",)),
    )(s)

    return out[:, :D] if D_pad != D else out


def reference_forward(s):
    """Plain-JAX mirror of the PyTorch Softmax.forward."""
    m = jnp.max(s, axis=1, keepdims=True)
    e = jnp.exp(s - m)
    return e / jnp.sum(e, axis=1, keepdims=True)


if __name__ == "__main__":
    key = jax.random.PRNGKey(0)
    k1, k2 = jax.random.split(key)

    # Small shape consistent with the module: (batch=8, hidden=32).
    # Scale up values to exercise the max-shift numerical-stability path.
    x = jax.random.normal(k1, (8, 32), jnp.float32) * 50.0

    out = jax.block_until_ready(softmax_forward(x))
    ref = reference_forward(x)
    assert out.shape == x.shape
    assert jnp.allclose(out, ref, atol=1e-5, rtol=1e-5), "mismatch vs reference"
    assert jnp.allclose(out.sum(axis=1), 1.0, atol=1e-5), "rows do not sum to 1"

    # Secondary check: multiple batch tiles, ragged last tile, lane padding.
    x2 = jax.random.normal(k2, (20, 160), jnp.float32)
    out2 = jax.block_until_ready(softmax_forward(x2, tile_b=8))
    ref2 = reference_forward(x2)
    assert jnp.allclose(out2, ref2, atol=1e-5, rtol=1e-5), "tiled mismatch"

    print("KERNEL_OK")
</pallas_src>

<mosaic_0001>
module attributes {stable_mosaic.version = 11 : i64} {
  func.func @softmax_kernel(%arg0: i32, %arg1: memref<8x128xf32, #tpu.memory_space<vmem>>, %arg2: memref<8x128xf32, #tpu.memory_space<vmem>>) attributes {dimension_semantics = [#tpu.dimension_semantics<parallel>], iteration_bounds = array<i64: 1>, scalar_prefetch = 0 : i64, scratch_operands = 0 : i64, tpu.core_type = #tpu.core_type<tc>, window_params = [{transform_indices = @transform_0, window_bounds = array<i64: 8, 128>}, {transform_indices = @transform_1, window_bounds = array<i64: 8, 128>}]} {
    %c0 = arith.constant 0 : index
    %c0_0 = arith.constant 0 : index
    %0 = vector.load %arg1[%c0, %c0_0] : memref<8x128xf32, #tpu.memory_space<vmem>>, vector<8x128xf32>
    %cst = arith.constant dense<0xFF800000> : vector<8xf32>
    %1 = vector.multi_reduction <maximumf>, %0, %cst [1] : vector<8x128xf32> to vector<8xf32>
    %2 = vector.shape_cast %1 : vector<8xf32> to vector<8x1xf32>
    %3 = vector.broadcast %2 : vector<8x1xf32> to vector<8x128xf32>
    %4 = arith.subf %0, %3 : vector<8x128xf32>
    %5 = math.exp %4 : vector<8x128xf32>
    %cst_1 = arith.constant dense<0.000000e+00> : vector<8xf32>
    %6 = vector.multi_reduction <add>, %5, %cst_1 [1] : vector<8x128xf32> to vector<8xf32>
    %7 = vector.shape_cast %6 : vector<8xf32> to vector<8x1xf32>
    %8 = vector.broadcast %7 : vector<8x1xf32> to vector<8x128xf32>
    %9 = arith.divf %5, %8 : vector<8x128xf32>
    %c0_2 = arith.constant 0 : index
    %c0_3 = arith.constant 0 : index
    %10 = vector.load %arg2[%c0_2, %c0_3] : memref<8x128xf32, #tpu.memory_space<vmem>>, vector<8x128xf32>
    tpu.vector_store %arg2[%c0_2, %c0_3], %9 {strides = array<i32>} : memref<8x128xf32, #tpu.memory_space<vmem>>, vector<8x128xf32>,
    return
  }
  func.func @transform_0(%arg0: i32) -> (i32, i32) {
    %c0_i32 = arith.constant 0 : i32
    %c0_i32_0 = arith.constant 0 : i32
    return %arg0, %c0_i32 : i32, i32
  }
  func.func @transform_1(%arg0: i32) -> (i32, i32) {
    %c0_i32 = arith.constant 0 : i32
    %c0_i32_0 = arith.constant 0 : i32
    return %arg0, %c0_i32 : i32, i32
  }
}

</mosaic_0001>

<bundles_post_ra>
// kernel: softmax_forward.1
= control target key start
LH: loop header
LB: loop body
LE: loop exit
PB: predicated region body
PF: predicated region fallthrough
CT: control target
= control target key end

     0   :  { %s89_s0 = inlined_call_operand.vmem [shape: f32[8,128], index: 0, kind: input, shape index: {}]   ;;  %s90_s1 = inlined_call_operand.hbm [shape: f32[8,128], index: 1, kind: output, shape index: {}]  }
   0x1   :  { %v9_v0 = vld [vmem:[%s89_s0] sm:$0xff] }
   0x2   :  { %6 = vsyncpa [#allocation3], 0  ;;  %10 = vmax.xlane.f32.xlu0 %v9_v0  ;;  %s63_s8 = smov [#allocation2]  }
   0x3   :  { %s26_s9 = sshll.u32 %s63_s8, 4  ;;  %s27_s9 = int_to_ptr.vmem [resolvable:$true] %s26_s9 }
   0x4   :  { %s39_s10 = scalar_lea.vmem %s27_s9, 128  ;;  %p44_p1 = scmp.lt.s32.totalorder %s27_s9, %s27_s9 }
   0x5   :  { %p40_p0 = scmp.ne.s32.totalorder %s27_s9, %s39_s10  ;;  %p45_p2 = scmp.lt.s32.totalorder %s39_s10, %s39_s10 }
   0x7   :  { %p46_p3 = por %p45_p2, %p44_p1 }
   0x9   :  { %p47_p4 = pnand %p46_p3, %p40_p0 }
  0x8f   :  { %v11_v1 = vpop.xlane.xlu0 %10 }
  0x90   :  { %v12_v2 = vsub.f32 %v9_v0, %v11_v1 }
  0x92   :  { %v13_v3 = vmul.f32 1.442695, %v12_v2 }
  0x94   :  { %35 = vpow2.f32 %v13_v3 }
  0x9e   :  { %v36_v4 = vpop.eup %35 }
  0x9f   :  { %15 = vadd.xlane.f32.xlu0 %v36_v4 }
 0x12c   :  { %v16_v5 = vpop.xlane.xlu0 %15 }
 0x12d   :  { %37 = vrcp.f32 %v16_v5 }
 0x137   :  { %v38_v6 = vpop.eup %37 }
 0x138   :  { %v18_v7 = vmul.f32 %v38_v6, %v36_v4 }
 0x13a   :  { %19 = vst [vmem:[#allocation2] sm:$0xff] %v18_v7 }
 0x13b   :  { %50 = shalt.err (!%p47_p4)
}
 0x13c   :  { %s51_s12 = scalar_lea.hbm %s90_s1, 128 }
 0x13d   :  { %p52_p5 = scmp.ne.s32.totalorder %s90_s1, %s51_s12  ;;  %p55_p6 = scmp.lt.u32.totalorder %s51_s12, %s90_s1 }
 0x13f   :  { %p57_p7 = pnand %p55_p6, %p52_p5 }
 0x141   :  { %60 = shalt.err (!%p57_p7)
}
 0x142   :  { %29 = dma.vmem_to_hbm [thread:$0]  %s27_s9, 128, %s90_s1, [#allocation3]  }
 0x143   :  { %61 = dma.done.wait [#allocation3], 128  }
 0x144   :  { %62 = vsyncadd [#allocation3], 4294967168 }
 0x145   :  { %33 = vsyncpa [#allocation3], 1 }

</bundles_post_ra>
